<compile_context>
chip_gen: v7x
topology: tpu7x:2x2x1
jax: 0.10.0
libtpu: 0.0.40
codegen_flags: <defaults>
</compile_context>

<pallas_src>
import functools

import jax
import jax.numpy as jnp
from jax.experimental import pallas as pl
from jax.experimental.pallas import tpu as pltpu


def _noise_injection_kernel(w_ref, noise_ref, img_ref, o_ref):
    """out = image + weight * noise  (noise broadcast over the channel axis).

    w_ref    : (1,)                f32 in SMEM
    noise_ref: (1, 1, hw_tile)     VMEM
    img_ref  : (1, c_tile, hw_tile) VMEM
    o_ref    : (1, c_tile, hw_tile) VMEM
    """
    w = w_ref[0]
    img = img_ref[...].astype(jnp.float32)
    nz = noise_ref[...].astype(jnp.float32)          # (1, 1, hw) -> broadcasts
    o_ref[...] = (img + w * nz).astype(o_ref.dtype)


def _pick_tiles(C, HW):
    """Choose (c_tile, hw_tile) respecting the (8, 128) layout constraint."""
    # Lane axis: full extent if small, otherwise a 128-multiple chunk.
    if HW <= 2048:
        hw_tile = HW
    else:
        hw_tile = 2048  # multiple of 128; partial tail block handled by Pallas
    # Sublane axis: full extent if < 8, otherwise a multiple of 8, capped.
    if C <= 8:
        c_tile = C
    else:
        c_tile = min((C // 8) * 8, 64)
    return c_tile, hw_tile


def noise_injection(image, weight, noise=None, *, key=None):
    """image: (N, C, H, W); weight: scalar; noise: (N, 1, H, W) or None."""
    N, C, H, W = image.shape
    HW = H * W

    if noise is None:
        if key is None:
            key = jax.random.PRNGKey(0)
        noise = jax.random.normal(key, (N, 1, H, W), dtype=image.dtype)

    # Layout plumbing only: flatten spatial dims onto the lane axis (pure
    # reshape of contiguous memory, no transpose / extra HBM pass).
    img2 = image.reshape(N, C, HW)
    noise2 = jnp.asarray(noise, dtype=image.dtype).reshape(N, 1, HW)
    w = jnp.asarray(weight, dtype=jnp.float32).reshape((1,))

    c_tile, hw_tile = _pick_tiles(C, HW)
    grid = (N, pl.cdiv(HW, hw_tile), pl.cdiv(C, c_tile))

    # VMEM budget: 2x double-buffered (image + noise + output) tiles, with
    # headroom; kept well under v7x's 64 MiB.
    itemsize = jnp.dtype(image.dtype).itemsize
    per_step = 2 * (c_tile * hw_tile + hw_tile + c_tile * hw_tile) * itemsize
    vmem_limit = int(min(max(4 * per_step, 8 << 20), 32 << 20))

    out = pl.pallas_call(
        _noise_injection_kernel,
        out_shape=jax.ShapeDtypeStruct((N, C, HW), image.dtype),
        grid=grid,
        in_specs=[
            # learnable scalar weight -> SMEM (scalar path)
            pl.BlockSpec(memory_space=pltpu.MemorySpace.SMEM),
            # noise: shared across channels; block index constant along ci
            pl.BlockSpec((1, 1, hw_tile), lambda n, hi, ci: (n, 0, hi)),
            # image
            pl.BlockSpec((1, c_tile, hw_tile), lambda n, hi, ci: (n, ci, hi)),
        ],
        out_specs=pl.BlockSpec((1, c_tile, hw_tile),
                               lambda n, hi, ci: (n, ci, hi)),
        compiler_params=pltpu.CompilerParams(
            dimension_semantics=("parallel", "parallel", "parallel"),
            vmem_limit_bytes=vmem_limit,
        ),
    )(w, noise2, img2)

    return out.reshape(N, C, H, W)


def noise_injection_ref(image, weight, noise):
    """Pure-JAX reference mirroring the PyTorch forward."""
    return image + jnp.asarray(weight, dtype=jnp.float32) * noise


if __name__ == "__main__":
    key = jax.random.PRNGKey(0)
    k_img, k_noise, k_gen = jax.random.split(key, 3)

    N, C, H, W = 2, 4, 16, 16
    image = jax.random.normal(k_img, (N, C, H, W), dtype=jnp.float32)
    noise = jax.random.normal(k_noise, (N, 1, H, W), dtype=jnp.float32)

    # Path 1: explicit noise, non-zero weight (exercises the broadcast MAC).
    weight = jnp.float32(0.37)
    out = noise_injection(image, weight, noise)
    out = jax.block_until_ready(out)
    ref = noise_injection_ref(image, weight, noise)
    assert out.shape == (N, C, H, W), out.shape
    assert jnp.allclose(out, ref, atol=1e-6, rtol=1e-6), \
        float(jnp.max(jnp.abs(out - ref)))

    # Path 2: module defaults -- weight initialized to zero, noise drawn
    # internally; output must equal the input exactly.
    out0 = noise_injection(image, jnp.zeros((), jnp.float32), None, key=k_gen)
    out0 = jax.block_until_ready(out0)
    assert jnp.array_equal(out0, image)

    print("KERNEL_OK")
</pallas_src>

<mosaic_0001>
module attributes {stable_mosaic.version = 11 : i64} {
  func.func @_noise_injection_kernel(%arg0: i32, %arg1: i32, %arg2: i32, %arg3: memref<1xf32, #tpu.memory_space<smem>>, %arg4: memref<1x1x256xf32, #tpu.memory_space<vmem>>, %arg5: memref<1x4x256xf32, #tpu.memory_space<vmem>>, %arg6: memref<1x4x256xf32, #tpu.memory_space<vmem>>) attributes {dimension_semantics = [#tpu.dimension_semantics<parallel>, #tpu.dimension_semantics<parallel>, #tpu.dimension_semantics<parallel>], iteration_bounds = array<i64: 2, 1, 1>, scalar_prefetch = 0 : i64, scratch_operands = 0 : i64, tpu.core_type = #tpu.core_type<tc>, window_params = [{transform_indices = @transform_0, window_bounds = array<i64: 1>}, {transform_indices = @transform_1, window_bounds = array<i64: 1, 1, 256>}, {transform_indices = @transform_2, window_bounds = array<i64: 1, 4, 256>}, {transform_indices = @transform_3, window_bounds = array<i64: 1, 4, 256>}]} {
    %c0 = arith.constant 0 : index
    %0 = memref.load %arg3[%c0] : memref<1xf32, #tpu.memory_space<smem>>
    %c0_0 = arith.constant 0 : index
    %c0_1 = arith.constant 0 : index
    %c0_2 = arith.constant 0 : index
    %1 = vector.load %arg5[%c0_0, %c0_1, %c0_2] : memref<1x4x256xf32, #tpu.memory_space<vmem>>, vector<1x4x256xf32>
    %c0_3 = arith.constant 0 : index
    %c0_4 = arith.constant 0 : index
    %c0_5 = arith.constant 0 : index
    %2 = vector.load %arg4[%c0_3, %c0_4, %c0_5] : memref<1x1x256xf32, #tpu.memory_space<vmem>>, vector<1x1x256xf32>
    %3 = vector.broadcast %0 : f32 to vector<1x1x256xf32>
    %4 = arith.mulf %3, %2 : vector<1x1x256xf32>
    %5 = vector.broadcast %4 : vector<1x1x256xf32> to vector<1x4x256xf32>
    %6 = arith.addf %1, %5 : vector<1x4x256xf32>
    %c0_6 = arith.constant 0 : index
    %c0_7 = arith.constant 0 : index
    %c0_8 = arith.constant 0 : index
    %7 = vector.load %arg6[%c0_6, %c0_7, %c0_8] : memref<1x4x256xf32, #tpu.memory_space<vmem>>, vector<1x4x256xf32>
    tpu.vector_store %arg6[%c0_6, %c0_7, %c0_8], %6 {strides = array<i32>} : memref<1x4x256xf32, #tpu.memory_space<vmem>>, vector<1x4x256xf32>,
    return
  }
  func.func @transform_0(%arg0: i32, %arg1: i32, %arg2: i32) -> i32 {
    %c0_i32 = arith.constant 0 : i32
    %c0_i32_0 = arith.constant 0 : i32
    return %c0_i32 : i32
  }
  func.func @transform_1(%arg0: i32, %arg1: i32, %arg2: i32) -> (i32, i32, i32) {
    %c0_i32 = arith.constant 0 : i32
    %c0_i32_0 = arith.constant 0 : i32
    return %arg0, %c0_i32, %arg1 : i32, i32, i32
  }
  func.func @transform_2(%arg0: i32, %arg1: i32, %arg2: i32) -> (i32, i32, i32) {
    %c0_i32 = arith.constant 0 : i32
    return %arg0, %arg2, %arg1 : i32, i32, i32
  }
  func.func @transform_3(%arg0: i32, %arg1: i32, %arg2: i32) -> (i32, i32, i32) {
    %c0_i32 = arith.constant 0 : i32
    return %arg0, %arg2, %arg1 : i32, i32, i32
  }
}

</mosaic_0001>

<bundles_post_ra>
// kernel: tpu_custom_call.1
= control target key start
LH: loop header
LB: loop body
LE: loop exit
PB: predicated region body
PF: predicated region fallthrough
CT: control target
= control target key end

     0   :  { %s896_s0 = inlined_call_operand.<no memory space> [shape: f32[1], index: 0, kind: input, shape index: {}]   ;;  %s897_s1 = inlined_call_operand.hbm [shape: f32[2,1,256], index: 1, kind: input, shape index: {}]   ;;  %s898_s2 = inlined_call_operand.hbm [shape: f32[2,4,256], index: 2, kind: input, shape index: {}]   ;;  %s899_s3 = inlined_call_operand.hbm [shape: f32[2,4,256], index: 3, kind: output, shape index: {}]  }
   0x1   :  { %8 = sst [smem:[#allocation2]] %s896_s0 }
   0x2   :  { %9 = vsyncpa [#allocation4], 0 }
   0x3   :  { %11 = vsyncpa [#allocation4 + $0x1], 0 }
   0x4   :  { %12 = vsyncpa [#allocation7], 0 }
   0x5   :  { %14 = vsyncpa [#allocation7 + $0x1], 0 }
   0x6   :  { %15 = vsyncpa [#allocation5], 0 }
   0x7   :  { %17 = vsyncpa [#allocation5 + $0x1], 0  ;;  %s681_s14 = smov 0   ;;  %s683_s15 = smov 0  }
   0x8   :  { %s685_s16 = smov 0   ;;  %s687_s17 = smov 0  }
   0x9   :  { %s689_s18 = smov 0   ;;  %s691_s19 = smov 0  }
   0xa LB: > { %s418_s0 = sadd.s32 4294967295, %s653_s19   ;;  %s419_s20 = sadd.s32 4294967294, %s653_s19   ;;  %s653_s19 = sphi %s691_s19, %s23_s19   ;;  %s649_s18 = sphi %s689_s18, %s919_s18   ;;  %s645_s17 = sphi %s687_s17, %s918_s17   ;;  %s641_s16 = sphi %s685_s16, %s917_s16   ;;  %s637_s15 = sphi %s683_s15, %s916_s15   ;;  %s633_s14 = sphi %s681_s14, %s915_s14  }
   0xb   : > { %s42_s21 = sadd.s32 1, %s649_s18  ;;  %s72_s22 = sadd.s32 1, %s641_s16 }
   0xc   : > { %p44_p0 = scmp.ge.s32.totalorder %s42_s21, 2  ;;  %p79_p1 = scmp.ne.s32.totalorder %s641_s16, %s637_s15 }
   0xd   : > { %p80_p2 = scmp.eq.s32.totalorder %s653_s19, 0  ;;  %p85_p3 = scmp.ne.s32.totalorder %s637_s15, %s633_s14 }
   0xe   : > { %s921_s21 = smov (%p44_p0, %s42_s21), 0  ;;  %p86_p5 = scmp.eq.s32.totalorder %s418_s0, 0 }
   0xf   : > { %p722_p4 = por %p80_p2, %p79_p1  ;;  %s67_s24 = ssub.s32 %s649_s18, %s921_s21 }
  0x10   : > { %p143_p6 = scmp.eq.s32.totalorder %s418_s0, 1  ;;  %p70_p7 = scmp.eq.s32.totalorder %s67_s24, 0 }
  0x11   : > { %p728_p8 = por %p86_p5, %p85_p3  ;;  %p149_p10 = scmp.eq.s32.totalorder %s419_s20, 1 }
  0x12   : > { %p732_p9 = por %p143_p6, %p79_p1  ;;  %p457_p13 = scmp.lt.s32.totalorder %s653_s19, 2 }
  0x13   : > { %s903_s25 = scalar_select %p728_p8, 1, 0 }
  0x14   : > { %s904_s26 = scalar_select %p732_p9, 1, 0 }
  0x15   : > { %s737_s27 = scalar_select %p70_p7, %s641_s16, %s72_s22  }
  0x16   : > { %p739_p11 = por %p149_p10, %p85_p3  ;;  %s746_s29 = sand.u32 1, %s641_s16  }
  0x17   : > { %s422_s30 = sshll.u32 %s746_s29, 1  ;;  %s437_s4 = sshll.u32 %s649_s18, 5 }
  0x18   : > { %s905_s28 = scalar_select %p739_p11, 1, 0 }
  0x19   : > { %s753_s7 = scalar_lea.hbm %s897_s1, %s437_s4  ;;  %s176_s8 = scalar_lea.vmem [#allocation3], %s422_s30 }
  0x1a   : > { %s186_s9 = sshll.u32 %s176_s8, 4  ;;  %p759_p0 = pnand %p457_p13, %p722_p4  ;;  %s755_s9 = int_to_ptr.vmem [resolvable:$true] %s186_s9 }
  0x1b   : > { %s173_s11 = scalar_lea.sflag [#allocation4], %s746_s29  ;;  %s507_s12 = scalar_lea.hbm %s753_s7, 32 }
  0x1c   : > { %p508_p3 = scmp.ne.s32.totalorder %s753_s7, %s507_s12  ;;  %p509_p5 = pneg %p759_p0 }
  0x1d   : > { %s512_s20 = scalar_lea.hbm %s897_s1, 64  ;;  %p513_p4 = scmp.lt.u32.totalorder %s753_s7, %s897_s1 }
  0x1e   : > { %p510_p6 = pnand %p509_p5, %p508_p3  ;;  %p514_p10 = scmp.lt.u32.totalorder %s512_s20, %s507_s12 }
  0x1f   : > { %p516_p12 = scmp.lt.u32.totalorder %s507_s12, %s753_s7 }
  0x20   : > { %p511_p7 = pneg %p510_p6  ;;  %p515_p13 = por %p514_p10, %p513_p4 }
  0x22   : > { %p517_p1 = por %p516_p12, %p515_p13 }
  0x24   : > { %p518_p2 = pnand %p517_p1, %p511_p7 }
  0x26   : > { %521 = shalt.err (!%p518_p2)
}
  0x27   : > { %s522_s24 = scalar_lea.vmem %s755_s9, 32  ;;  %s655_s30 = smov [#allocation3]  }
  0x28   : > { %p523_p3 = scmp.ne.s32.totalorder %s755_s9, %s522_s24  ;;  %s527_s4 = sshll.u32 %s655_s30, 4  ;;  %s528_s4 = int_to_ptr.vmem [resolvable:$false] %s527_s4 }
  0x29   : > { %s529_s5 = scalar_lea.vmem %s528_s4, 64  ;;  %p530_p9 = scmp.lt.s32.totalorder %s755_s9, %s528_s4 }
  0x2a   : > { %p525_p6 = pnand %p523_p3, %p509_p5  ;;  %p531_p4 = scmp.lt.s32.totalorder %s529_s5, %s522_s24 }
  0x2c   : > { %p526_p11 = pneg %p525_p6  ;;  %p532_p10 = por %p531_p4, %p530_p9 }
  0x2e   : > { %p533_p12 = pnand %p532_p10, %p526_p11 }
  0x30   : > { %536 = shalt.err (!%p533_p12)
}
  0x31   : > { %449 = dma.hbm_to_vmem [thread:$0]  (!%p759_p0), %s753_s7, 32, %s755_s9, %s173_s11  }
  0x32   : > { %p907_p1 = scmp.lt.s32.totalorder %s653_s19, 3  ;;  %p908_p2 = scmp.ge.s32.totalorder %s653_s19, 1 }
  0x33   : > { %s425_s8 = sshll.u32 %s746_s29, 3  ;;  %s438_s12 = sshll.u32 %s649_s18, 7 }
  0x34   : > { %p795_p7 = pnand %p908_p2, %p907_p1  ;;  %s804_s20 = scalar_lea.hbm %s898_s2, %s438_s12 }
  0x35   : > { %s197_s22 = scalar_lea.vmem [#allocation6], %s425_s8  ;;  %s194_s7 = scalar_lea.sflag [#allocation7], %s746_s29 }
  0x36   : > { %s909_s6 = scalar_select %p795_p7, 1, 0 }
  0x37   : > { %s209_s23 = sshll.u32 %s197_s22, 4  ;;  %s537_s9 = scalar_lea.hbm %s804_s20, 128  ;;  %s210_s23 = int_to_ptr.vmem [resolvable:$true] %s209_s23 }
  0x38   : > { %p538_p9 = scmp.ne.s32.totalorder %s804_s20, %s537_s9  ;;  %s542_s30 = scalar_lea.hbm %s898_s2, 256 }
  0x39   : > { %p543_p3 = scmp.lt.u32.totalorder %s804_s20, %s898_s2  ;;  %p544_p6 = scmp.lt.u32.totalorder %s542_s30, %s537_s9 }
  0x3a   : > { %p540_p11 = pnand %p538_p9, %p509_p5  ;;  %p546_p10 = scmp.lt.u32.totalorder %s537_s9, %s804_s20 }
  0x3b   : > { %p545_p4 = por %p544_p6, %p543_p3 }
  0x3c   : > { %p541_p13 = pneg %p540_p11 }
  0x3d   : > { %p547_p12 = por %p546_p10, %p545_p4 }
  0x3f   : > { %p548_p1 = pnand %p547_p12, %p541_p13 }
  0x41   : > { %551 = shalt.err (!%p548_p1)
}
  0x42   : > { %s552_s29 = scalar_lea.vmem %s210_s23, 128  ;;  %s656_s8 = smov [#allocation6]  }
  0x43   : > { %p553_p2 = scmp.ne.s32.totalorder %s210_s23, %s552_s29  ;;  %s557_s12 = sshll.u32 %s656_s8, 4  ;;  %s558_s12 = int_to_ptr.vmem [resolvable:$false] %s557_s12 }
  0x44   : > { %s559_s13 = scalar_lea.vmem %s558_s12, 256  ;;  %p560_p8 = scmp.lt.s32.totalorder %s210_s23, %s558_s12 }
  0x45   : > { %p555_p9 = pnand %p553_p2, %p509_p5  ;;  %p561_p7 = scmp.lt.s32.totalorder %s559_s13, %s552_s29 }
  0x47   : > { %p556_p11 = pneg %p555_p9  ;;  %p562_p3 = por %p561_p7, %p560_p8 }
  0x49   : > { %p563_p6 = pnand %p562_p3, %p556_p11 }
  0x4b   : > { %566 = shalt.err (!%p563_p6)
}
  0x4c   : > { %452 = dma.hbm_to_vmem [thread:$0]  (!%p759_p0), %s804_s20, 128, %s210_s23, %s194_s7  }
  0x4d   : > { %p910_p13 = scmp.ne.s32.totalorder %s909_s6, 0 }
  0x4e   : > { %s829_s0 = sand.u32 (!%p910_p13), 1, %s637_s15   ;;  %p911_p5 = scmp.ne.s32.totalorder (!%p910_p13), %s903_s25, 0 }
  0x4f   : > { %218 = sbr.rel (%p910_p13) target bundleno = 119 (0x77), region = 32  ;;  %s429_s22 = sshll.u32 (!%p910_p13), %s829_s0, 1 }
  0x50   : > { %s221_s9 = scalar_lea.sflag (!%p910_p13), [#allocation4], %s829_s0  ;;  %s224_s11 = scalar_lea.vmem (!%p910_p13), [#allocation3], %s429_s22 }
  0x56   : > { %620 = dma.done.wait (%p911_p5), %s221_s9, 32  }
  0x57   : > { %622 = vsyncadd (%p911_p5), %s221_s9, 4294967264  ;;  %s430_s10 = sshll.u32 %s829_s0, 3  ;;  %s230_s6 = scalar_lea.sflag [#allocation7], %s829_s0 }
  0x58   : > { %s233_s20 = scalar_lea.vmem [#allocation6], %s430_s10 }
  0x59   : > { %624 = dma.done.wait (%p911_p5), %s230_s6, 128  }
  0x5a   : > { %626 = vsyncadd (%p911_p5), %s230_s6, 4294967168  ;;  %v270_v0 = vlaneseq  ;;  %s264_s23 = sld [smem:[#allocation2]]  ;;  %v266_v4 = vld [vmem:[%s224_s11] sm:$0x3]  ;;  %v265_v9 = vld [vmem:[%s233_s20] sm:$0xff]  ;;  %s260_s7 = scalar_lea.vmem [#allocation8], %s430_s10 }
  0x5b   : > { %s301_s24 = sshll.u32 %s260_s7, 4  ;;  %s439_s30 = sshll.u32 %s645_s17, 7  ;;  %s844_s24 = int_to_ptr.vmem [resolvable:$true] %s301_s24 }
  0x5c   : > { %v271_v1 = vshrl.u32 %v270_v0, 7  ;;  %s849_s5 = scalar_lea.hbm %s899_s3, %s439_s30  ;;  %s283_s29 = scalar_lea.sflag [#allocation5], %s829_s0 }
  0x5d   : > { %s567_s8 = scalar_lea.vmem %s844_s24, 128  ;;  %p912_p0 = scmp.ne.s32.totalorder %s904_s26, 0 }
  0x5e   : > { %v272_v2 = vsub.s32 0, %v271_v1  ;;  %v276_v3 = vsub.s32 1, %v271_v1  ;;  %p568_p8 = scmp.ne.s32.totalorder %s844_s24, %s567_s8  ;;  %s657_s17 = smov [#allocation8]  }
  0x5f   : > { %s571_s12 = sshll.u32 %s657_s17, 4  ;;  %s572_s12 = int_to_ptr.vmem [resolvable:$false] %s571_s12 }
  0x60   : > { %v267_v5 = vstv %s264_s23  ;;  %p569_p7 = pnand %p568_p8, %p912_p0  ;;  %s573_s13 = scalar_lea.vmem %s572_s12, 256 }
  0x61   : > { %v268_v6 = vmul.f32 %v267_v5, %v266_v4  ;;  %p574_p10 = scmp.lt.s32.totalorder %s844_s24, %s572_s12  ;;  %p575_p12 = scmp.lt.s32.totalorder %s573_s13, %s567_s8 }
  0x62   : > { %p570_p4 = pneg %p569_p7 }
  0x63   : > { %v273_v7 = vrot.slane %v268_v6, %v272_v2  ;;  %v277_v8 = vrot.slane %v268_v6, %v276_v3  ;;  %p576_p1 = por %p575_p12, %p574_p10 }
  0x65   : > { %v278_v10 = vcombine.low %v273_v7, %v277_v8  ;;  %p577_p2 = pnand %p576_p1, %p570_p4 }
  0x67   : > { %v280_v11 = vadd.f32 %v278_v10, %v265_v9 }
  0x69   : > { %281 = vst [vmem:[%s260_s7] sm:$0xff] %v280_v11 }
  0x6a   : > { %580 = shalt.err (!%p577_p2)
}
  0x6b   : > { %s581_s0 = scalar_lea.hbm %s849_s5, 128  ;;  %s585_s11 = scalar_lea.hbm %s899_s3, 256 }
  0x6c   : > { %p582_p9 = scmp.ne.s32.totalorder %s849_s5, %s581_s0  ;;  %p586_p6 = scmp.lt.u32.totalorder %s849_s5, %s899_s3 }
  0x6d   : > { %p587_p13 = scmp.lt.u32.totalorder %s585_s11, %s581_s0  ;;  %p589_p8 = scmp.lt.u32.totalorder %s581_s0, %s849_s5 }
  0x6e   : > { %p583_p11 = pnand %p582_p9, %p912_p0 }
  0x6f   : > { %p588_p5 = por %p587_p13, %p586_p6 }
  0x70   : > { %p584_p3 = pneg %p583_p11 }
  0x71   : > { %p590_p7 = por %p589_p8, %p588_p5 }
  0x73   : > { %p591_p4 = pnand %p590_p7, %p584_p3 }
  0x75   : > { %594 = shalt.err (!%p591_p4)
}
  0x76   : > { %444 = dma.vmem_to_hbm [thread:$0]  (%p912_p0), %s844_s24, 128, %s849_s5, %s283_s29  }
  0x77 PF: > { %s313_s20 = sand.u32 1, %s633_s14   ;;  %p913_p10 = scmp.ne.s32.totalorder %s905_s28, 0 }
  0x78   : > { %p914_p12 = scmp.ge.s32.totalorder %s653_s19, 2  ;;  %s314_s23 = scalar_lea.sflag [#allocation5], %s313_s20 }
  0x7a   : > { %p454_p1 = pnand %p914_p12, %p913_p10 }
  0x7c   : > { %628 = dma.done.wait (!%p454_p1), %s314_s23, 128  }
  0x7d   : > { %630 = vsyncadd (!%p454_p1), %s314_s23, 4294967168  ;;  %s23_s19 = sadd.s32 1, %s653_s19   ;;  %s915_s14 = smov %s637_s15 }
  0x7e   : > { %p20_p2 = scmp.ge.s32.totalorder %s23_s19, 4   ;;  %s916_s15 = smov %s641_s16 }
  0x7f   : > { %s917_s16 = smov %s737_s27  ;;  %s918_s17 = smov %s649_s18 }
  0x80   : > { %s919_s18 = smov %s921_s21  ;;  %22 = sbr.rel (!%p20_p2) target bundleno = 10 (0xa), region = 90 }
  0x87   :  { %319 = vsyncpa [#allocation4], 1 }
  0x88   :  { %321 = vsyncpa [#allocation4 + $0x1], 1 }
  0x89   :  { %322 = vsyncpa [#allocation7], 1 }
  0x8a   :  { %324 = vsyncpa [#allocation7 + $0x1], 1 }
  0x8b   :  { %325 = vsyncpa [#allocation5], 1 }
  0x8c   :  { %327 = vsyncpa [#allocation5 + $0x1], 1 }

</bundles_post_ra>
